<compile_context>
chip_gen: v7x
topology: tpu7x:2x2x1
jax: 0.10.0
libtpu: 0.0.40
codegen_flags: <defaults>
</compile_context>

<pallas_src>
import jax
import jax.numpy as jnp
import numpy as np
from jax.experimental import pallas as pl
from jax.experimental.pallas import tpu as pltpu

BN_EPS = 1e-5


def _tree_sum(terms):
    """Balanced-tree accumulation (cuts the 9-deep serial VALU add chain)."""
    terms = list(terms)
    while len(terms) > 1:
        nxt = [terms[i] + terms[i + 1] for i in range(0, len(terms) - 1, 2)]
        if len(terms) % 2:
            nxt.append(terms[-1])
        terms = nxt
    return terms[0]


def _model_kernel(x_ref, wa_ref, wc_ref, gb_ref, o_ref):
    """
    x_ref  : (N, H, W)     f32 VMEM -- unpadded input
    wa_ref : (9,)          f32 SMEM -- conv-a 3x3 weights (row-major)
    wc_ref : (9,)          f32 SMEM -- conv-c 3x3 weights (row-major)
    gb_ref : (2,)          f32 SMEM -- [gamma, beta]
    o_ref  : (N, H-2, W-2) f32 VMEM -- output
    """
    x = x_ref[...]
    N, Hi, Wi = x.shape
    Ho, Wo = Hi - 2, Wi - 2

    # Hoist all SMEM scalar reads out of the tap loops.
    wa = [wa_ref[k] for k in range(9)]
    wc = [wc_ref[k] for k in range(9)]
    gamma = gb_ref[0]
    beta = gb_ref[1]

    def shift2d(v, dr, dc):
        """result[:, i, j] = v[:, (i + dr) % Hi, (j + dc) % Wi] via XLU rolls."""
        if dr % Hi:
            v = pltpu.roll(v, (-dr) % Hi, axis=1)   # sublane rotation
        if dc % Wi:
            v = pltpu.roll(v, (-dc) % Wi, axis=2)   # lane rotation
        return v

    # ---- conv a over the full (Hi, Wi) domain via rotations ----------------
    # Rows/cols 1..Ho / 1..Wo hold the valid conv of x; the border ring holds
    # wrapped values that are excluded from the stats and zeroed for conv-c.
    o1x = _tree_sum(wa[3 * di + dj] * shift2d(x, di - 1, dj - 1)
                    for di in range(3) for dj in range(3))

    # ---- BatchNorm2d (training mode): single-pass biased stats -------------
    # Stats from the interior slice directly (no o1m select / temporary).
    # TODO(synk): tiled variant should use shifted / two-pass accumulation to
    # avoid E[x^2]-mean^2 cancellation for large-|mean| data.
    o1i = o1x[:, 1:1 + Ho, 1:1 + Wo]
    inv_n = 1.0 / float(N * Ho * Wo)
    s = jnp.sum(o1i)
    ssq = jnp.sum(o1i * o1i)
    mu = s * inv_n
    var = jnp.maximum(ssq * inv_n - mu * mu, 0.0)    # biased variance, clamped
    scale = gamma * jax.lax.rsqrt(var + BN_EPS)
    shift = beta - scale * mu

    # Zero-padded, normalized activation; 2-D mask broadcast over N.
    row = jax.lax.broadcasted_iota(jnp.int32, (1, Hi, Wi), 1)
    col = jax.lax.broadcasted_iota(jnp.int32, (1, Hi, Wi), 2)
    interior = (row >= 1) & (row <= Ho) & (col >= 1) & (col <= Wo)
    o2p = jnp.where(interior, scale * o1x + shift, 0.0)

    # ---- conv c (padding=1) == valid conv over zero-padded o2 --------------
    # Wrapped values from the rolls land at rows >= Ho / cols >= Wo, i.e.
    # outside the kept window, so one aligned slice at the end suffices.
    o3 = _tree_sum(wc[3 * di + dj] * shift2d(o2p, di, dj)
                   for di in range(3) for dj in range(3))
    o_ref[...] = o3[:, 0:Ho, 0:Wo]


def model_forward(x_nchw, wa, wc, gamma, beta):
    """x_nchw: (N, 1, H, W) f32; wa/wc: (1,1,3,3); gamma/beta: (1,).
    Returns (N, 1, H-2, W-2) f32."""
    N, C, H, W = x_nchw.shape
    assert C == 1, "model is defined for a single channel"
    assert H >= 3 and W >= 3, "conv-a (valid 3x3) needs H, W >= 3"
    Ho, Wo = H - 2, W - 2

    # Fold the size-1 channel dim (free reshape of a size-1 dim).
    x = x_nchw.reshape(N, H, W).astype(jnp.float32)

    # Single-block kernel: BN needs global batch statistics, so everything is
    # kept resident.  Live-set estimate counts x, o1x, o2p, a few rolled
    # temporaries, the 2-D mask and the output.
    est_bytes = 4 * (8 * N * H * W + N * Ho * Wo + H * W)
    assert est_bytes < 24 * 1024 * 1024, (
        "input too large for the single-block kernel; needs the tiled "
        "two-pass BN variant")
    # TODO(synk): tiled two-pass BN grid (parallel over N / row bands, 1-row
    # halo, lane-dense output) for inputs beyond the single-block VMEM budget.

    out = pl.pallas_call(
        _model_kernel,
        out_shape=jax.ShapeDtypeStruct((N, Ho, Wo), jnp.float32),
        in_specs=[
            pl.BlockSpec(memory_space=pltpu.MemorySpace.VMEM),   # x
            pl.BlockSpec(memory_space=pltpu.MemorySpace.SMEM),   # wa (9,)
            pl.BlockSpec(memory_space=pltpu.MemorySpace.SMEM),   # wc (9,)
            pl.BlockSpec(memory_space=pltpu.MemorySpace.SMEM),   # [gamma, beta]
        ],
        out_specs=pl.BlockSpec(memory_space=pltpu.MemorySpace.VMEM),
        compiler_params=pltpu.CompilerParams(
            vmem_limit_bytes=32 * 1024 * 1024),
    )(x,
      wa.reshape(9).astype(jnp.float32),
      wc.reshape(9).astype(jnp.float32),
      jnp.concatenate([gamma, beta]).astype(jnp.float32))

    return out.reshape(N, 1, Ho, Wo)


def _reference_forward(x, wa, wc, gamma, beta):
    """Pure-JAX reference matching PyTorch semantics (training-mode BN)."""
    dn = ("NCHW", "OIHW", "NCHW")
    o1 = jax.lax.conv_general_dilated(x, wa, (1, 1), "VALID",
                                      dimension_numbers=dn)
    mu = o1.mean()
    var = ((o1 - mu) ** 2).mean()
    o2 = gamma[0] * (o1 - mu) / jnp.sqrt(var + BN_EPS) + beta[0]
    o3 = jax.lax.conv_general_dilated(o2, wc, (1, 1), ((1, 1), (1, 1)),
                                      dimension_numbers=dn)
    return o3


if __name__ == "__main__":
    key = jax.random.PRNGKey(0)
    kx, ka, kc = jax.random.split(key, 3)

    # Small shapes consistent with the module: 1 in / 1 out channel.
    x = jax.random.normal(kx, (2, 1, 16, 16), dtype=jnp.float32)

    # Deterministic parameters (Conv2d weight shapes (1,1,3,3); BN affine).
    wa = jax.random.normal(ka, (1, 1, 3, 3), dtype=jnp.float32) * (1.0 / 3.0)
    wc = jax.random.normal(kc, (1, 1, 3, 3), dtype=jnp.float32) * (1.0 / 3.0)
    gamma = jnp.full((1,), 1.25, dtype=jnp.float32)   # BatchNorm2d weight
    beta = jnp.full((1,), -0.30, dtype=jnp.float32)   # BatchNorm2d bias

    out = model_forward(x, wa, wc, gamma, beta)
    out = jax.block_until_ready(out)

    ref = _reference_forward(x, wa, wc, gamma, beta)
    np.testing.assert_allclose(np.asarray(out), np.asarray(ref),
                               rtol=1e-4, atol=1e-4)
    assert out.shape == (2, 1, 14, 14)
    print("KERNEL_OK")
</pallas_src>

<mosaic_0001>
module attributes {stable_mosaic.version = 11 : i64} {
  func.func @_model_kernel(%arg0: memref<2x16x16xf32, #tpu.memory_space<vmem>>, %arg1: memref<9xf32, #tpu.memory_space<smem>>, %arg2: memref<9xf32, #tpu.memory_space<smem>>, %arg3: memref<2xf32, #tpu.memory_space<smem>>, %arg4: memref<2x14x14xf32, #tpu.memory_space<vmem>>) attributes {dimension_semantics = [], scalar_prefetch = 0 : i64, scratch_operands = 0 : i64, tpu.core_type = #tpu.core_type<tc>} {
    %c0 = arith.constant 0 : index
    %c0_0 = arith.constant 0 : index
    %c0_1 = arith.constant 0 : index
    %0 = vector.load %arg0[%c0, %c0_0, %c0_1] : memref<2x16x16xf32, #tpu.memory_space<vmem>>, vector<2x16x16xf32>
    %c0_2 = arith.constant 0 : index
    %1 = memref.load %arg1[%c0_2] : memref<9xf32, #tpu.memory_space<smem>>
    %c1 = arith.constant 1 : index
    %2 = memref.load %arg1[%c1] : memref<9xf32, #tpu.memory_space<smem>>
    %c2 = arith.constant 2 : index
    %3 = memref.load %arg1[%c2] : memref<9xf32, #tpu.memory_space<smem>>
    %c3 = arith.constant 3 : index
    %4 = memref.load %arg1[%c3] : memref<9xf32, #tpu.memory_space<smem>>
    %c4 = arith.constant 4 : index
    %5 = memref.load %arg1[%c4] : memref<9xf32, #tpu.memory_space<smem>>
    %c5 = arith.constant 5 : index
    %6 = memref.load %arg1[%c5] : memref<9xf32, #tpu.memory_space<smem>>
    %c6 = arith.constant 6 : index
    %7 = memref.load %arg1[%c6] : memref<9xf32, #tpu.memory_space<smem>>
    %c7 = arith.constant 7 : index
    %8 = memref.load %arg1[%c7] : memref<9xf32, #tpu.memory_space<smem>>
    %c8 = arith.constant 8 : index
    %9 = memref.load %arg1[%c8] : memref<9xf32, #tpu.memory_space<smem>>
    %c0_3 = arith.constant 0 : index
    %10 = memref.load %arg2[%c0_3] : memref<9xf32, #tpu.memory_space<smem>>
    %c1_4 = arith.constant 1 : index
    %11 = memref.load %arg2[%c1_4] : memref<9xf32, #tpu.memory_space<smem>>
    %c2_5 = arith.constant 2 : index
    %12 = memref.load %arg2[%c2_5] : memref<9xf32, #tpu.memory_space<smem>>
    %c3_6 = arith.constant 3 : index
    %13 = memref.load %arg2[%c3_6] : memref<9xf32, #tpu.memory_space<smem>>
    %c4_7 = arith.constant 4 : index
    %14 = memref.load %arg2[%c4_7] : memref<9xf32, #tpu.memory_space<smem>>
    %c5_8 = arith.constant 5 : index
    %15 = memref.load %arg2[%c5_8] : memref<9xf32, #tpu.memory_space<smem>>
    %c6_9 = arith.constant 6 : index
    %16 = memref.load %arg2[%c6_9] : memref<9xf32, #tpu.memory_space<smem>>
    %c7_10 = arith.constant 7 : index
    %17 = memref.load %arg2[%c7_10] : memref<9xf32, #tpu.memory_space<smem>>
    %c8_11 = arith.constant 8 : index
    %18 = memref.load %arg2[%c8_11] : memref<9xf32, #tpu.memory_space<smem>>
    %c0_12 = arith.constant 0 : index
    %19 = memref.load %arg3[%c0_12] : memref<2xf32, #tpu.memory_space<smem>>
    %c1_13 = arith.constant 1 : index
    %20 = memref.load %arg3[%c1_13] : memref<2xf32, #tpu.memory_space<smem>>
    %c1_i32 = arith.constant 1 : i32
    %21 = tpu.dynamic_rotate %0 by %c1_i32 dim 1 : vector<2x16x16xf32>, i32 -> vector<2x16x16xf32>
    %c1_i32_14 = arith.constant 1 : i32
    %22 = tpu.dynamic_rotate %21 by %c1_i32_14 dim 2 : vector<2x16x16xf32>, i32 -> vector<2x16x16xf32>
    %23 = vector.broadcast %1 : f32 to vector<2x16x16xf32>
    %24 = arith.mulf %23, %22 : vector<2x16x16xf32>
    %c1_i32_15 = arith.constant 1 : i32
    %25 = tpu.dynamic_rotate %0 by %c1_i32_15 dim 1 : vector<2x16x16xf32>, i32 -> vector<2x16x16xf32>
    %26 = vector.broadcast %2 : f32 to vector<2x16x16xf32>
    %27 = arith.mulf %26, %25 : vector<2x16x16xf32>
    %c1_i32_16 = arith.constant 1 : i32
    %28 = tpu.dynamic_rotate %0 by %c1_i32_16 dim 1 : vector<2x16x16xf32>, i32 -> vector<2x16x16xf32>
    %c15_i32 = arith.constant 15 : i32
    %29 = tpu.dynamic_rotate %28 by %c15_i32 dim 2 : vector<2x16x16xf32>, i32 -> vector<2x16x16xf32>
    %30 = vector.broadcast %3 : f32 to vector<2x16x16xf32>
    %31 = arith.mulf %30, %29 : vector<2x16x16xf32>
    %c1_i32_17 = arith.constant 1 : i32
    %32 = tpu.dynamic_rotate %0 by %c1_i32_17 dim 2 : vector<2x16x16xf32>, i32 -> vector<2x16x16xf32>
    %33 = vector.broadcast %4 : f32 to vector<2x16x16xf32>
    %34 = arith.mulf %33, %32 : vector<2x16x16xf32>
    %35 = vector.broadcast %5 : f32 to vector<2x16x16xf32>
    %36 = arith.mulf %35, %0 : vector<2x16x16xf32>
    %c15_i32_18 = arith.constant 15 : i32
    %37 = tpu.dynamic_rotate %0 by %c15_i32_18 dim 2 : vector<2x16x16xf32>, i32 -> vector<2x16x16xf32>
    %38 = vector.broadcast %6 : f32 to vector<2x16x16xf32>
    %39 = arith.mulf %38, %37 : vector<2x16x16xf32>
    %c15_i32_19 = arith.constant 15 : i32
    %40 = tpu.dynamic_rotate %0 by %c15_i32_19 dim 1 : vector<2x16x16xf32>, i32 -> vector<2x16x16xf32>
    %c1_i32_20 = arith.constant 1 : i32
    %41 = tpu.dynamic_rotate %40 by %c1_i32_20 dim 2 : vector<2x16x16xf32>, i32 -> vector<2x16x16xf32>
    %42 = vector.broadcast %7 : f32 to vector<2x16x16xf32>
    %43 = arith.mulf %42, %41 : vector<2x16x16xf32>
    %c15_i32_21 = arith.constant 15 : i32
    %44 = tpu.dynamic_rotate %0 by %c15_i32_21 dim 1 : vector<2x16x16xf32>, i32 -> vector<2x16x16xf32>
    %45 = vector.broadcast %8 : f32 to vector<2x16x16xf32>
    %46 = arith.mulf %45, %44 : vector<2x16x16xf32>
    %c15_i32_22 = arith.constant 15 : i32
    %47 = tpu.dynamic_rotate %0 by %c15_i32_22 dim 1 : vector<2x16x16xf32>, i32 -> vector<2x16x16xf32>
    %c15_i32_23 = arith.constant 15 : i32
    %48 = tpu.dynamic_rotate %47 by %c15_i32_23 dim 2 : vector<2x16x16xf32>, i32 -> vector<2x16x16xf32>
    %49 = vector.broadcast %9 : f32 to vector<2x16x16xf32>
    %50 = arith.mulf %49, %48 : vector<2x16x16xf32>
    %51 = arith.addf %24, %27 : vector<2x16x16xf32>
    %52 = arith.addf %31, %34 : vector<2x16x16xf32>
    %53 = arith.addf %36, %39 : vector<2x16x16xf32>
    %54 = arith.addf %43, %46 : vector<2x16x16xf32>
    %55 = arith.addf %51, %52 : vector<2x16x16xf32>
    %56 = arith.addf %53, %54 : vector<2x16x16xf32>
    %57 = arith.addf %55, %56 : vector<2x16x16xf32>
    %58 = arith.addf %57, %50 : vector<2x16x16xf32>
    %59 = vector.extract_strided_slice %58 {offsets = [0, 1, 1], sizes = [2, 14, 14], strides = [1, 1, 1]} : vector<2x16x16xf32> to vector<2x14x14xf32>
    %60 = vector.shape_cast %59 : vector<2x14x14xf32> to vector<1x2x14x14xf32>
    %cst = arith.constant dense<0.000000e+00> : vector<1xf32>
    %61 = vector.multi_reduction <add>, %60, %cst [1, 2, 3] : vector<1x2x14x14xf32> to vector<1xf32>
    %62 = vector.shape_cast %61 : vector<1xf32> to vector<1x1x1x1xf32>
    %63 = vector.extract %62[0, 0, 0, 0] : f32 from vector<1x1x1x1xf32>
    %64 = arith.mulf %59, %59 : vector<2x14x14xf32>
    %65 = vector.shape_cast %64 : vector<2x14x14xf32> to vector<1x2x14x14xf32>
    %cst_24 = arith.constant dense<0.000000e+00> : vector<1xf32>
    %66 = vector.multi_reduction <add>, %65, %cst_24 [1, 2, 3] : vector<1x2x14x14xf32> to vector<1xf32>
    %67 = vector.shape_cast %66 : vector<1xf32> to vector<1x1x1x1xf32>
    %68 = vector.extract %67[0, 0, 0, 0] : f32 from vector<1x1x1x1xf32>
    %cst_25 = arith.constant 0.00255102036 : f32
    %69 = arith.mulf %63, %cst_25 : f32
    %cst_26 = arith.constant 0.00255102036 : f32
    %70 = arith.mulf %68, %cst_26 : f32
    %71 = arith.mulf %69, %69 : f32
    %72 = arith.subf %70, %71 : f32
    %cst_27 = arith.constant 0.000000e+00 : f32
    %73 = arith.maximumf %72, %cst_27 : f32
    %cst_28 = arith.constant 9.99999974E-6 : f32
    %74 = arith.addf %73, %cst_28 : f32
    %75 = math.rsqrt %74 : f32
    %76 = arith.mulf %19, %75 : f32
    %77 = arith.mulf %76, %69 : f32
    %78 = arith.subf %20, %77 : f32
    %79 = tpu.iota {dimensions = array<i32: 1>} : vector<1x16x16xi32>
    %80 = tpu.iota {dimensions = array<i32: 2>} : vector<1x16x16xi32>
    %c1_i32_29 = arith.constant 1 : i32
    %81 = vector.broadcast %c1_i32_29 : i32 to vector<1x16x16xi32>
    %82 = arith.cmpi sge, %79, %81 : vector<1x16x16xi32>
    %c14_i32 = arith.constant 14 : i32
    %83 = vector.broadcast %c14_i32 : i32 to vector<1x16x16xi32>
    %84 = arith.cmpi sle, %79, %83 : vector<1x16x16xi32>
    %85 = arith.andi %82, %84 : vector<1x16x16xi1>
    %c1_i32_30 = arith.constant 1 : i32
    %86 = vector.broadcast %c1_i32_30 : i32 to vector<1x16x16xi32>
    %87 = arith.cmpi sge, %80, %86 : vector<1x16x16xi32>
    %88 = arith.andi %85, %87 : vector<1x16x16xi1>
    %c14_i32_31 = arith.constant 14 : i32
    %89 = vector.broadcast %c14_i32_31 : i32 to vector<1x16x16xi32>
    %90 = arith.cmpi sle, %80, %89 : vector<1x16x16xi32>
    %91 = arith.andi %88, %90 : vector<1x16x16xi1>
    %92 = vector.broadcast %76 : f32 to vector<2x16x16xf32>
    %93 = arith.mulf %92, %58 : vector<2x16x16xf32>
    %94 = vector.broadcast %78 : f32 to vector<2x16x16xf32>
    %95 = arith.addf %93, %94 : vector<2x16x16xf32>
    %cst_32 = arith.constant 0.000000e+00 : f32
    %96 = vector.shape_cast %91 : vector<1x16x16xi1> to vector<1x16x16xi1>
    %97 = vector.broadcast %96 : vector<1x16x16xi1> to vector<2x16x16xi1>
    %98 = vector.broadcast %cst_32 : f32 to vector<2x16x16xf32>
    %99 = arith.select %97, %95, %98 : vector<2x16x16xi1>, vector<2x16x16xf32>
    %100 = vector.broadcast %10 : f32 to vector<2x16x16xf32>
    %101 = arith.mulf %100, %99 : vector<2x16x16xf32>
    %c15_i32_33 = arith.constant 15 : i32
    %102 = tpu.dynamic_rotate %99 by %c15_i32_33 dim 2 : vector<2x16x16xf32>, i32 -> vector<2x16x16xf32>
    %103 = vector.broadcast %11 : f32 to vector<2x16x16xf32>
    %104 = arith.mulf %103, %102 : vector<2x16x16xf32>
    %c14_i32_34 = arith.constant 14 : i32
    %105 = tpu.dynamic_rotate %99 by %c14_i32_34 dim 2 : vector<2x16x16xf32>, i32 -> vector<2x16x16xf32>
    %106 = vector.broadcast %12 : f32 to vector<2x16x16xf32>
    %107 = arith.mulf %106, %105 : vector<2x16x16xf32>
    %c15_i32_35 = arith.constant 15 : i32
    %108 = tpu.dynamic_rotate %99 by %c15_i32_35 dim 1 : vector<2x16x16xf32>, i32 -> vector<2x16x16xf32>
    %109 = vector.broadcast %13 : f32 to vector<2x16x16xf32>
    %110 = arith.mulf %109, %108 : vector<2x16x16xf32>
    %c15_i32_36 = arith.constant 15 : i32
    %111 = tpu.dynamic_rotate %99 by %c15_i32_36 dim 1 : vector<2x16x16xf32>, i32 -> vector<2x16x16xf32>
    %c15_i32_37 = arith.constant 15 : i32
    %112 = tpu.dynamic_rotate %111 by %c15_i32_37 dim 2 : vector<2x16x16xf32>, i32 -> vector<2x16x16xf32>
    %113 = vector.broadcast %14 : f32 to vector<2x16x16xf32>
    %114 = arith.mulf %113, %112 : vector<2x16x16xf32>
    %c15_i32_38 = arith.constant 15 : i32
    %115 = tpu.dynamic_rotate %99 by %c15_i32_38 dim 1 : vector<2x16x16xf32>, i32 -> vector<2x16x16xf32>
    %c14_i32_39 = arith.constant 14 : i32
    %116 = tpu.dynamic_rotate %115 by %c14_i32_39 dim 2 : vector<2x16x16xf32>, i32 -> vector<2x16x16xf32>
    %117 = vector.broadcast %15 : f32 to vector<2x16x16xf32>
    %118 = arith.mulf %117, %116 : vector<2x16x16xf32>
    %c14_i32_40 = arith.constant 14 : i32
    %119 = tpu.dynamic_rotate %99 by %c14_i32_40 dim 1 : vector<2x16x16xf32>, i32 -> vector<2x16x16xf32>
    %120 = vector.broadcast %16 : f32 to vector<2x16x16xf32>
    %121 = arith.mulf %120, %119 : vector<2x16x16xf32>
    %c14_i32_41 = arith.constant 14 : i32
    %122 = tpu.dynamic_rotate %99 by %c14_i32_41 dim 1 : vector<2x16x16xf32>, i32 -> vector<2x16x16xf32>
    %c15_i32_42 = arith.constant 15 : i32
    %123 = tpu.dynamic_rotate %122 by %c15_i32_42 dim 2 : vector<2x16x16xf32>, i32 -> vector<2x16x16xf32>
    %124 = vector.broadcast %17 : f32 to vector<2x16x16xf32>
    %125 = arith.mulf %124, %123 : vector<2x16x16xf32>
    %c14_i32_43 = arith.constant 14 : i32
    %126 = tpu.dynamic_rotate %99 by %c14_i32_43 dim 1 : vector<2x16x16xf32>, i32 -> vector<2x16x16xf32>
    %c14_i32_44 = arith.constant 14 : i32
    %127 = tpu.dynamic_rotate %126 by %c14_i32_44 dim 2 : vector<2x16x16xf32>, i32 -> vector<2x16x16xf32>
    %128 = vector.broadcast %18 : f32 to vector<2x16x16xf32>
    %129 = arith.mulf %128, %127 : vector<2x16x16xf32>
    %130 = arith.addf %101, %104 : vector<2x16x16xf32>
    %131 = arith.addf %107, %110 : vector<2x16x16xf32>
    %132 = arith.addf %114, %118 : vector<2x16x16xf32>
    %133 = arith.addf %121, %125 : vector<2x16x16xf32>
    %134 = arith.addf %130, %131 : vector<2x16x16xf32>
    %135 = arith.addf %132, %133 : vector<2x16x16xf32>
    %136 = arith.addf %134, %135 : vector<2x16x16xf32>
    %137 = arith.addf %136, %129 : vector<2x16x16xf32>
    %138 = vector.extract_strided_slice %137 {offsets = [0, 0, 0], sizes = [2, 14, 14], strides = [1, 1, 1]} : vector<2x16x16xf32> to vector<2x14x14xf32>
    %c0_45 = arith.constant 0 : index
    %c0_46 = arith.constant 0 : index
    %c0_47 = arith.constant 0 : index
    %139 = vector.load %arg4[%c0_45, %c0_46, %c0_47] : memref<2x14x14xf32, #tpu.memory_space<vmem>>, vector<2x14x14xf32>
    tpu.vector_store %arg4[%c0_45, %c0_46, %c0_47], %138 {strides = array<i32>} : memref<2x14x14xf32, #tpu.memory_space<vmem>>, vector<2x14x14xf32>,
    return
  }
}

</mosaic_0001>

<bundles_post_ra>
// kernel: tpu_custom_call.1
= control target key start
LH: loop header
LB: loop body
LE: loop exit
PB: predicated region body
PF: predicated region fallthrough
CT: control target
= control target key end

     0   :  { %9 = vsyncpa [#allocation3], 0  ;;  %s1438_s0 = inlined_call_operand.hbm [shape: f32[2,16,16], index: 0, kind: input, shape index: {}]   ;;  %s1439_s1 = inlined_call_operand.vmem [shape: f32[9], index: 1, kind: input, shape index: {}]   ;;  %s1440_s2 = inlined_call_operand.vmem [shape: f32[9], index: 2, kind: input, shape index: {}]   ;;  %s1441_s3 = inlined_call_operand.vmem [shape: f32[2], index: 3, kind: input, shape index: {}]   ;;  %s1442_s4 = inlined_call_operand.vmem [shape: f32[2,14,14], index: 4, kind: output, shape index: {}]  }
   0x1   :  { %10 = vsyncpa [#allocation4], 0 }
   0x2   :  { %11 = vsyncpa [#allocation7], 0  ;;  %s40_s17 = sshll.u32 %s1440_s2, 4  ;;  %s41_s17 = int_to_ptr.vmem [resolvable:$true] %s40_s17 }
   0x3   :  { %s880_s18 = scalar_lea.vmem %s41_s17, 16  ;;  %p885_p1 = scmp.lt.s32.totalorder %s41_s17, %s41_s17 }
   0x4   :  { %p881_p0 = scmp.ne.s32.totalorder %s41_s17, %s880_s18  ;;  %p886_p2 = scmp.lt.s32.totalorder %s880_s18, %s880_s18 }
   0x6   :  { %p887_p3 = por %p886_p2, %p885_p1 }
   0x8   :  { %p888_p4 = pnand %p887_p3, %p881_p0 }
   0xa   :  { %891 = shalt.err (!%p888_p4)
}
   0xb   :  { %s944_s19 = smov [#allocation6]   ;;  %s945_s20 = smov [#allocation2]  }
   0xc   :  { %43 = dma.vmem_to_smem %s41_s17, 16, %s944_s19, [#allocation7]  }
   0xd   :  { %s17_s21 = sshll.u32 %s945_s20, 4  ;;  %s892_s24 = scalar_lea.hbm %s1438_s0, 512  ;;  %s18_s21 = int_to_ptr.vmem [resolvable:$true] %s17_s21 }
   0xe   :  { %p893_p5 = scmp.ne.s32.totalorder %s1438_s0, %s892_s24  ;;  %p896_p6 = scmp.lt.u32.totalorder %s892_s24, %s1438_s0 }
  0x10   :  { %p898_p7 = pnand %p896_p6, %p893_p5 }
  0x12   :  { %901 = shalt.err (!%p898_p7)
}
  0x13   :  { %s902_s28 = scalar_lea.vmem %s18_s21, 512  ;;  %p907_p9 = scmp.lt.s32.totalorder %s18_s21, %s18_s21 }
  0x14   :  { %p903_p8 = scmp.ne.s32.totalorder %s18_s21, %s902_s28  ;;  %p908_p10 = scmp.lt.s32.totalorder %s902_s28, %s902_s28 }
  0x16   :  { %p909_p11 = por %p908_p10, %p907_p9 }
  0x18   :  { %p910_p12 = pnand %p909_p11, %p903_p8 }
  0x1a   :  { %913 = shalt.err (!%p910_p12)
}
  0x1b   :  { %s946_s29 = smov 128   ;;  %s947_s30 = smov 8  }
  0x1c   :  { %23 = dma.hbm_to_vmem [thread:$0]  %s1438_s0, 512, %s18_s21, [#allocation3], %s946_s29, %s946_s29, %s947_s30  }
  0x1d   :  { %s30_s9 = sshll.u32 %s1439_s1, 4  ;;  %s50_s12 = sshll.u32 %s1441_s3, 4  ;;  %s31_s9 = int_to_ptr.vmem [resolvable:$true] %s30_s9  ;;  %s51_s12 = int_to_ptr.vmem [resolvable:$true] %s50_s12 }
  0x1e   :  { %s914_s13 = scalar_lea.vmem %s31_s9, 16  ;;  %p919_p0 = scmp.lt.s32.totalorder %s31_s9, %s31_s9 }
  0x1f   :  { %p915_p13 = scmp.ne.s32.totalorder %s31_s9, %s914_s13  ;;  %p920_p1 = scmp.lt.s32.totalorder %s914_s13, %s914_s13 }
  0x21   :  { %p921_p2 = por %p920_p1, %p919_p0 }
  0x23   :  { %p922_p3 = pnand %p921_p2, %p915_p13 }
  0x25   :  { %925 = shalt.err (!%p922_p3)
}
  0x26   :  { %s948_s14 = smov [#allocation5]   ;;  %s926_s0 = scalar_lea.vmem %s51_s12, 16 }
  0x27   :  { %33 = dma.vmem_to_smem %s31_s9, 16, %s948_s14, [#allocation4]  }
  0x28   :  { %p927_p4 = scmp.ne.s32.totalorder %s51_s12, %s926_s0  ;;  %p931_p5 = scmp.lt.s32.totalorder %s51_s12, %s51_s12 }
  0x29   :  { %p932_p6 = scmp.lt.s32.totalorder %s926_s0, %s926_s0 }
  0x2b   :  { %p933_p7 = por %p932_p6, %p931_p5 }
  0x2d   :  { %p934_p8 = pnand %p933_p7, %p927_p4 }
  0x2f   :  { %937 = shalt.err (!%p934_p8)
}
  0x30   :  { %s949_s1 = smov [#allocation8]  }
  0x31   :  { %53 = dma.vmem_to_smem %s51_s12, 16, %s949_s1, [#allocation7]  }
  0x32   :  { %938 = dma.done.wait [#allocation3], 512  }
  0x33   :  { %939 = vsyncadd [#allocation3], 4294966784 }
  0x34   :  { %940 = dma.done.wait [#allocation4], 16  }
  0x35   :  { %941 = vsyncadd [#allocation4], 4294967280 }
  0x36   :  { %942 = dma.done.wait [#allocation7], 32  }
  0x37   :  { %943 = vsyncadd [#allocation7], 4294967264 }
  0x38   :  { %66 = sfence }
  0x39   :  { %v1007_v0 = vld [vmem:[#allocation2] sm:$0xff]  ;;  %v1009_v1 = vld [vmem:[#allocation2 + $0x8] sm:$0xff]  ;;  %v95_v2 = vlaneseq  ;;  %s950_s3 = smov 16   ;;  %v1018_v6 = vld [vmem:[#allocation2 + $0x18] sm:$0xff]  ;;  %s844_s15 = sld [smem:[#allocation5 + $0x7]]  ;;  %vm102_vm2 = vcmask 1047680  }
  0x3a   :  { %142 = vrot.lane.b32.xlu0 %v1007_v0, %s950_s3  ;;  %v181_v3 = vrot.slane %v1007_v0, 1  ;;  %v183_v4 = vrot.slane %v1009_v1, 1  ;;  %v1027_v8 = vld [vmem:[#allocation2 + $0x10] sm:$0xff]  ;;  %v184_v10 = vrot.slane %v1018_v6, 1  ;;  %v91_v13 = vrot.slane %v1007_v0, 7  ;;  %s951_s16 = smov 15  }
  0x3b   :  { %v1016_v5 = vshrl.u32 %v95_v2, 7  ;;  %v182_v9 = vrot.slane %v1027_v8, 1  ;;  %v93_v14 = vrot.slane %v1009_v1, 7  ;;  %v92_v16 = vrot.slane %v1027_v8, 7  ;;  %s840_s17 = sld [smem:[#allocation5 + $0x3]]  ;;  %s842_s18 = sld [smem:[#allocation5 + $0x5]] }
  0x3c   :  { %v94_v17 = vrot.slane %v1018_v6, 7  ;;  %s843_s19 = sld [smem:[#allocation5 + $0x6]]  ;;  %s952_s20 = smov 114   ;;  %vm393_vm3 = vcmask 1046528   ;;  %vm414_vm4 = vcmask 111616   ;;  %vm412_vm5 = vcmask 113664  }
  0x3d   :  { %vm185_vm0 = vcmp.lt.s32.totalorder %v1016_v5, 7  ;;  %vm97_vm1 = vcmp.lt.s32.totalorder %v1016_v5, 1  ;;  %s953_s21 = smov 127   ;;  %s845_s22 = sld [smem:[#allocation5 + $0x8]]  ;;  %vm487_vm8 = vcmp.ge.s32.totalorder %v1016_v5, 1  ;;  %vm623_vm14 = vcmp.lt.s32.totalorder %v1016_v5, 6 }
  0x3e   :  { %145 = vrot.lane.b32.xlu0 %v1009_v1, %s950_s3  ;;  %v1025_v7 = vsel %vm185_vm0, %v181_v3, %v183_v4  ;;  %v1035_v11 = vsel %vm185_vm0, %v183_v4, %v181_v3  ;;  %v1043_v12 = vsel %vm185_vm0, %v182_v9, %v184_v10  ;;  %v1052_v15 = vsel %vm97_vm1, %v93_v14, %v91_v13  ;;  %s838_s23 = sld [smem:[#allocation5 + $0x1]]  ;;  %s954_s24 = smov 113  }
  0x3f   :  { %190 = vrot.lane.b32.xlu1 %v1025_v7, %s950_s3  ;;  %v1058_v18 = vsel %vm185_vm0, %v184_v10, %v182_v9  ;;  %v1064_v19 = vsel %vm97_vm1, %v94_v17, %v92_v16  ;;  %v219_v20 = vstv %s844_s15  ;;  %v1066_v21 = vsel %vm97_vm1, %v91_v13, %v93_v14  ;;  %s955_s25 = smov 14   ;;  %s839_s26 = sld [smem:[#allocation5 + $0x2]] }
  0x40   :  { %v220_v22 = vmul.f32 %v219_v20, %v1025_v7  ;;  %v1073_v23 = vsel %vm97_vm1, %v92_v16, %v94_v17  ;;  %v221_v24 = vmul.f32 %v219_v20, %v1035_v11  ;;  %v222_v40 = vmul.f32 %v219_v20, %v1043_v12  ;;  %s841_s2 = sld [smem:[#allocation5 + $0x4]]  ;;  %s71_s27 = sld [smem:[#allocation5]] }
  0x41   :  { %v223_v43 = vmul.f32 %v219_v20, %v1058_v18  ;;  %v166_v53 = vstv %s840_s17  ;;  %v176_v57 = vstv %s842_s18  ;;  %s956_s28 = smov 112   ;;  %s957_s9 = smov 0.0  }
  0x42   :  { %148 = vrot.lane.b32.xlu0 %v1027_v8, %s950_s3  ;;  %v214_v9 = vstv %s843_s19  ;;  %s89_s12 = sld [smem:[#allocation8]]  ;;  %s854_s13 = sld [smem:[#allocation8 + $0x1]] }
  0x43   :  { %193 = vrot.lane.b32.xlu1 %v1035_v11, %s950_s3  ;;  %s853_s17 = sld [smem:[#allocation6 + $0x8]]  ;;  %s848_s18 = sld [smem:[#allocation6 + $0x3]] }
  0x44   :  { %s850_s19 = sld [smem:[#allocation6 + $0x5]] }
  0x46   :  { %196 = vrot.lane.b32.xlu0 %v1043_v12, %s950_s3 }
  0x47   :  { %151 = vrot.lane.b32.xlu1 %v1018_v6, %s950_s3 }
  0x4a   :  { %103 = vrot.lane.b32.xlu0 %v1052_v15, %s950_s3 }
  0x4b   :  { %199 = vrot.lane.b32.xlu1 %v1058_v18, %s950_s3 }
  0x4e   :  { %109 = vrot.lane.b32.xlu0 %v1064_v19, %s950_s3 }
  0x4f   :  { %106 = vrot.lane.b32.xlu1 %v1066_v21, %s950_s3 }
  0x52   :  { %293 = vrot.lane.b32.xlu0 %v220_v22, %s951_s16 }
  0x53   :  { %112 = vrot.lane.b32.xlu1 %v1073_v23, %s950_s3 }
  0x57   :  { %295 = vrot.lane.b32.xlu1 %v221_v24, %s951_s16 }
  0xac   :  { %v143_v25 = vpop.permute.xlu0 %142 }
  0xad   :  { %v144_v26 = vsel %vm102_vm2, %v143_v25, %v1007_v0  ;;  %v224_v25 = vstv %s845_s22  ;;  %s846_s22 = sld [smem:[#allocation6 + $0x1]] }
  0xae   :  { %154 = vrot.lane.b32.xlu0 %v144_v26, %s950_s3 }
  0xb0   :  { %v146_v27 = vpop.permute.xlu0 %145 }
  0xb1   :  { %v191_v28 = vpop.permute.xlu1 %190  ;;  %v147_v29 = vsel %vm102_vm2, %v146_v27, %v1009_v1 }
  0xb2   :  { %156 = vrot.lane.b32.xlu1 %v147_v29, %s950_s3  ;;  %v192_v35 = vsel %vm102_vm2, %v191_v28, %v1025_v7 }
  0xb4   :  { %v149_v30 = vpop.permute.xlu0 %148 }
  0xb5   :  { %v194_v31 = vpop.permute.xlu1 %193  ;;  %v150_v32 = vsel %vm102_vm2, %v149_v30, %v1027_v8 }
  0xb6   :  { %158 = vrot.lane.b32.xlu0 %v150_v32, %s950_s3  ;;  %v195_v39 = vsel %vm102_vm2, %v194_v31, %v1035_v11 }
  0xb8   :  { %v197_v33 = vpop.permute.xlu0 %196 }
  0xb9   :  { %v152_v34 = vpop.permute.xlu1 %151  ;;  %v198_v37 = vsel %vm102_vm2, %v197_v33, %v1043_v12 }
  0xba   :  { %202 = vrot.lane.b32.xlu0 %v192_v35, %s950_s3  ;;  %v153_v36 = vsel %vm102_vm2, %v152_v34, %v1018_v6 }
  0xbb   :  { %160 = vrot.lane.b32.xlu1 %v153_v36, %s950_s3 }
  0xbc   :  { %v104_v42 = vpop.permute.xlu0 %103 }
  0xbd   :  { %v200_v38 = vpop.permute.xlu1 %199  ;;  %v105_v45 = vsel %vm102_vm2, %v104_v42, %v1052_v15 }
  0xbe   :  { %206 = vrot.lane.b32.xlu0 %v198_v37, %s950_s3  ;;  %v201_v41 = vsel %vm102_vm2, %v200_v38, %v1058_v18 }
  0xbf   :  { %204 = vrot.lane.b32.xlu1 %v195_v39, %s950_s3 }
  0xc0   :  { %v110_v46 = vpop.permute.xlu0 %109 }
  0xc1   :  { %v107_v44 = vpop.permute.xlu1 %106  ;;  %v111_v47 = vsel %vm102_vm2, %v110_v46, %v1064_v19 }
  0xc2   :  { %297 = vrot.lane.b32.xlu0 %v222_v40, %s951_s16  ;;  %v108_v48 = vsel %vm102_vm2, %v107_v44, %v1066_v21 }
  0xc3   :  { %208 = vrot.lane.b32.xlu1 %v201_v41, %s950_s3 }
  0xc4   :  { %v294_v51 = vpop.permute.xlu0 %293 }
  0xc5   :  { %v113_v49 = vpop.permute.xlu1 %112 }
  0xc6   :  { %115 = vrot.lane.b32.xlu0 %v105_v45, %s950_s3  ;;  %v114_v50 = vsel %vm102_vm2, %v113_v49, %v1073_v23 }
  0xc7   :  { %299 = vrot.lane.b32.xlu1 %v223_v43, %s951_s16 }
  0xc9   :  { %v296_v52 = vpop.permute.xlu1 %295 }
  0xca   :  { %119 = vrot.lane.b32.xlu0 %v111_v47, %s950_s3 }
  0xcb   :  { %117 = vrot.lane.b32.xlu1 %v108_v48, %s950_s3 }
  0xcf   :  { %121 = vrot.lane.b32.xlu1 %v114_v50, %s950_s3  ;;  %v137_v50 = vstv %s839_s26  ;;  %s849_s26 = sld [smem:[#allocation6 + $0x4]] }
 0x120   :  { %v155_v54 = vpop.permute.xlu0 %154 }
 0x121   :  { %v162_v55 = vsel %vm102_vm2, %v155_v54, %v1007_v0 }
 0x122   :  { %v167_v56 = vmul.f32 %v166_v53, %v162_v55  ;;  %v177_v60 = vmul.f32 %v176_v57, %v162_v55 }
 0x124   :  { %253 = vrot.lane.b32.xlu0 %v167_v56, %s952_s20  ;;  %v157_v58 = vpop.permute.xlu1 %156 }
 0x125   :  { %v163_v59 = vsel %vm102_vm2, %v157_v58, %v1009_v1 }
 0x126   :  { %v168_v61 = vmul.f32 %v166_v53, %v163_v59  ;;  %v178_v3 = vmul.f32 %v176_v57, %v163_v59 }
 0x128   :  { %273 = vrot.lane.b32.xlu0 %v177_v60, %s953_s21  ;;  %v159_v62 = vpop.permute.xlu0 %158  ;;  %255 = vrot.lane.b32.xlu1 %v168_v61, %s952_s20  ;;  %v171_v61 = vstv %s841_s2  ;;  %s80_s2 = sld [smem:[#allocation6]] }
 0x129   :  { %v164_v63 = vsel %vm102_vm2, %v159_v62, %v1027_v8 }
 0x12a   :  { %v169_v4 = vmul.f32 %v166_v53, %v164_v63  ;;  %v179_v10 = vmul.f32 %v176_v57, %v164_v63 }
 0x12c   :  { %257 = vrot.lane.b32.xlu0 %v169_v4, %s952_s20  ;;  %v203_v13 = vpop.permute.xlu0 %202  ;;  %275 = vrot.lane.b32.xlu1 %v178_v3, %s953_s21  ;;  %v172_v4 = vmul.f32 %v171_v61, %v1007_v0 }
 0x12d   :  { %v210_v14 = vsel %vm102_vm2, %v203_v13, %v1025_v7  ;;  %v161_v16 = vpop.permute.xlu1 %160 }
 0x12e   :  { %v215_v17 = vmul.f32 %v214_v9, %v210_v14  ;;  %v165_v20 = vsel %vm102_vm2, %v161_v16, %v1018_v6  ;;  %v225_v44 = vmul.f32 %v224_v25, %v210_v14  ;;  %v174_v16 = vmul.f32 %v171_v61, %v1027_v8 }
 0x12f   :  { %v170_v22 = vmul.f32 %v166_v53, %v165_v20  ;;  %v180_v31 = vmul.f32 %v176_v57, %v165_v20 }
 0x130   :  { %277 = vrot.lane.b32.xlu0 %v179_v10, %s953_s21  ;;  %v207_v24 = vpop.permute.xlu0 %206  ;;  %v305_v30 = vadd.f32 %v294_v51, %v215_v17  ;;  %v173_v17 = vmul.f32 %v171_v61, %v1009_v1 }
 0x131   :  { %v212_v26 = vsel %vm102_vm2, %v207_v24, %v1043_v12  ;;  %259 = vrot.lane.b32.xlu1 %v170_v22, %s952_s20  ;;  %v205_v27 = vpop.permute.xlu1 %204  ;;  %v132_v12 = vstv %s838_s23  ;;  %s958_s20 = smov 2   ;;  %s959_s23 = smov 1  }
 0x132   :  { %v217_v28 = vmul.f32 %v214_v9, %v212_v26  ;;  %v1135_v29 = vmul.f32 %v224_v25, %v212_v26  ;;  %v211_v7 = vsel %vm102_vm2, %v205_v27, %v1035_v11  ;;  %v133_v11 = vmul.f32 %v132_v12, %v1052_v15 }
 0x133   :  { %v216_v32 = vmul.f32 %v214_v9, %v211_v7  ;;  %v135_v42 = vmul.f32 %v132_v12, %v1064_v19  ;;  %v136_v43 = vmul.f32 %v132_v12, %v1073_v23  ;;  %v226_v45 = vmul.f32 %v224_v25, %v211_v7 }
 0x134   :  { %333 = vrot.lane.b32.xlu0 %v305_v30, %s954_s24  ;;  %v298_v33 = vpop.permute.xlu0 %297 }
 0x135   :  { %v307_v34 = vadd.f32 %v298_v33, %v217_v28  ;;  %279 = vrot.lane.b32.xlu1 %v180_v31, %s953_s21  ;;  %v209_v35 = vpop.permute.xlu1 %208  ;;  %v306_v39 = vadd.f32 %v296_v52, %v216_v32 }
 0x136   :  { %v213_v36 = vsel %vm102_vm2, %v209_v35, %v1058_v18  ;;  %v134_v18 = vmul.f32 %v132_v12, %v1066_v21  ;;  %v127_v12 = vstv %s71_s27 }
 0x137   :  { %v218_v37 = vmul.f32 %v214_v9, %v213_v36  ;;  %v1143_v38 = vmul.f32 %v224_v25, %v213_v36  ;;  %v175_v25 = vmul.f32 %v171_v61, %v1018_v6 }
 0x138   :  { %337 = vrot.lane.b32.xlu0 %v307_v34, %s954_s24  ;;  %v116_v46 = vpop.permute.xlu0 %115 }
 0x139   :  { %335 = vrot.lane.b32.xlu1 %v306_v39, %s954_s24  ;;  %v300_v40 = vpop.permute.xlu1 %299  ;;  %v123_v49 = vsel %vm102_vm2, %v116_v46, %v1052_v15 }
 0x13a   :  { %v308_v41 = vadd.f32 %v300_v40, %v218_v37  ;;  %v138_v51 = vmul.f32 %v137_v50, %v123_v49  ;;  %v128_v37 = vmul.f32 %v127_v12, %v123_v49 }
 0x13c   :  { %233 = vrot.lane.b32.xlu0 %v133_v11, %s951_s16  ;;  %v120_v48 = vpop.permute.xlu0 %119 }
 0x13d   :  { %339 = vrot.lane.b32.xlu1 %v308_v41, %s954_s24  ;;  %v118_v47 = vpop.permute.xlu1 %117  ;;  %v125_v57 = vsel %vm102_vm2, %v120_v48, %v1064_v19 }
 0x13e   :  { %v124_v52 = vsel %vm102_vm2, %v118_v47, %v1066_v21  ;;  %v140_v15 = vmul.f32 %v137_v50, %v125_v57 }
 0x13f   :  { %v139_v56 = vmul.f32 %v137_v50, %v124_v52  ;;  %v129_v41 = vmul.f32 %v127_v12, %v124_v52 }
 0x140   :  { %237 = vrot.lane.b32.xlu0 %v135_v42, %s951_s16 }
 0x141   :  { %235 = vrot.lane.b32.xlu1 %v134_v18, %s951_s16  ;;  %v122_v53 = vpop.permute.xlu1 %121 }
 0x142   :  { %v126_v21 = vsel %vm102_vm2, %v122_v53, %v1073_v23 }
 0x143   :  { %v141_v10 = vmul.f32 %v137_v50, %v126_v21  ;;  %v131_v50 = vmul.f32 %v127_v12, %v126_v21 }
 0x144   :  { %373 = vrot.lane.b32.xlu0 %v225_v44, %s955_s25 }
 0x145   :  { %239 = vrot.lane.b32.xlu1 %v136_v43, %s951_s16 }
 0x149   :  { %375 = vrot.lane.b32.xlu1 %v226_v45, %s955_s25 }
 0x196   :  { %v254_v54 = vpop.permute.xlu0 %253 }
 0x197   :  { %v265_v55 = vadd.f32 %v254_v54, %v138_v51 }
 0x199   :  { %313 = vrot.lane.b32.xlu0 %v265_v55, %s955_s25 }
 0x19a   :  { %v274_v58 = vpop.permute.xlu0 %273  ;;  %v256_v59 = vpop.permute.xlu1 %255 }
 0x19b   :  { %v266_v60 = vadd.f32 %v256_v59, %v139_v56  ;;  %v285_v14 = vadd.f32 %v274_v58, %v172_v4 }
 0x19d   :  { %315 = vrot.lane.b32.xlu1 %v266_v60, %s955_s25 }
 0x19e   :  { %v258_v62 = vpop.permute.xlu0 %257  ;;  %v276_v63 = vpop.permute.xlu1 %275 }
 0x19f   :  { %v267_v3 = vadd.f32 %v258_v62, %v140_v15  ;;  %v286_v0 = vadd.f32 %v276_v63, %v173_v17 }
 0x1a1   :  { %317 = vrot.lane.b32.xlu0 %v267_v3, %s955_s25 }
 0x1a2   :  { %v278_v9 = vpop.permute.xlu0 %277 }
 0x1a3   :  { %v260_v19 = vpop.permute.xlu1 %259  ;;  %v287_v23 = vadd.f32 %v278_v9, %v174_v16 }
 0x1a4   :  { %v268_v13 = vadd.f32 %v260_v19, %v141_v10 }
 0x1a6   :  { %v334_v20 = vpop.permute.xlu0 %333  ;;  %319 = vrot.lane.b32.xlu1 %v268_v13, %s955_s25 }
 0x1a7   :  { %v345_v22 = vadd.f32 %v334_v20, %v285_v14  ;;  %v280_v24 = vpop.permute.xlu1 %279 }
 0x1a8   :  { %v288_v8 = vadd.f32 %v280_v24, %v175_v25 }
 0x1a9   :  { %353 = vrot.lane.b32.xlu0 %v345_v22, %s951_s16 }
 0x1aa   :  { %v338_v26 = vpop.permute.xlu0 %337 }
 0x1ab   :  { %v347_v27 = vadd.f32 %v338_v26, %v287_v23  ;;  %v336_v28 = vpop.permute.xlu1 %335 }
 0x1ac   :  { %v346_v7 = vadd.f32 %v336_v28, %v286_v0 }
 0x1ad   :  { %357 = vrot.lane.b32.xlu0 %v347_v27, %s951_s16 }
 0x1ae   :  { %355 = vrot.lane.b32.xlu1 %v346_v7, %s951_s16  ;;  %v234_v6 = vpop.permute.xlu0 %233 }
 0x1af   :  { %v340_v1 = vpop.permute.xlu1 %339  ;;  %v245_v40 = vadd.f32 %v234_v6, %v128_v37 }
 0x1b0   :  { %v348_v30 = vadd.f32 %v340_v1, %v288_v8 }
 0x1b1   :  { %377 = vrot.lane.b32.xlu0 %v1135_v29, %s955_s25 }
 0x1b2   :  { %359 = vrot.lane.b32.xlu1 %v348_v30, %s951_s16  ;;  %v238_v32 = vpop.permute.xlu0 %237  ;;  %s852_s16 = sld [smem:[#allocation6 + $0x7]] }
 0x1b3   :  { %v236_v31 = vpop.permute.xlu1 %235 }
 0x1b4   :  { %v246_v43 = vadd.f32 %v236_v31, %v129_v41 }
 0x1b6   :  { %379 = vrot.lane.b32.xlu1 %v1143_v38, %s955_s25  ;;  %v374_v34 = vpop.permute.xlu0 %373  ;;  %v130_v38 = vmul.f32 %v127_v12, %v125_v57  ;;  %s960_s25 = smov 126  }
 0x1b7   :  { %v240_v33 = vpop.permute.xlu1 %239 }
 0x1b8   :  { %v247_v48 = vadd.f32 %v238_v32, %v130_v38  ;;  %v248_v54 = vadd.f32 %v240_v33, %v131_v50 }
 0x1bb   :  { %v376_v36 = vpop.permute.xlu1 %375 }
 0x20b   :  { %v314_v35 = vpop.permute.xlu0 %313 }
 0x20c   :  { %v325_v29 = vadd.f32 %v314_v35, %v245_v40 }
 0x20f   :  { %v316_v11 = vpop.permute.xlu1 %315 }
 0x210   :  { %v326_v45 = vadd.f32 %v316_v11, %v246_v43 }
 0x213   :  { %v318_v39 = vpop.permute.xlu0 %317 }
 0x214   :  { %v327_v49 = vadd.f32 %v318_v39, %v247_v48 }
 0x218   :  { %v320_v18 = vpop.permute.xlu1 %319 }
 0x219   :  { %v328_v58 = vadd.f32 %v320_v18, %v248_v54 }
 0x21b   :  { %v354_v42 = vpop.permute.xlu0 %353 }
 0x21c   :  { %v365_v44 = vadd.f32 %v354_v42, %v325_v29 }
 0x21e   :  { %v1182_v51 = vadd.f32 %v374_v34, %v365_v44 }
 0x21f   :  { %v358_v46 = vpop.permute.xlu0 %357 }
 0x220   :  { %v356_v47 = vpop.permute.xlu1 %355  ;;  %v367_v59 = vadd.f32 %v358_v46, %v327_v49  ;;  %v394_v57 = vrot.slane %v1182_v51, 1  ;;  %v430_v4 = vmul.f32 %v1182_v51, %v1182_v51 }
 0x221   :  { %v366_v53 = vadd.f32 %v356_v47, %v326_v45 }
 0x222   :  { %v438_v16 = vrot.slane %v430_v4, 1 }
 0x223   :  { %v1184_v55 = vadd.f32 %v376_v36, %v366_v53  ;;  %v378_v56 = vpop.permute.xlu0 %377 }
 0x224   :  { %v360_v52 = vpop.permute.xlu1 %359  ;;  %v1188_v15 = vadd.f32 %v378_v56, %v367_v59 }
 0x225   :  { %v395_v60 = vrot.slane %v1184_v55, 1  ;;  %v368_v61 = vadd.f32 %v360_v52, %v328_v58  ;;  %v431_v21 = vmul.f32 %v1184_v55, %v1184_v55 }
 0x226   :  { %v397_v9 = vrot.slane %v1188_v15, 1  ;;  %v432_v17 = vmul.f32 %v1188_v15, %v1188_v15 }
 0x227   :  { %402 = vrot.lane.b32.xlu1 %v395_v60, %s956_s28  ;;  %v396_v62 = vsel %vm393_vm3, %v394_v57, %v395_v60  ;;  %v439_v19 = vrot.slane %v431_v21, 1 }
 0x228   :  { %400 = vrot.lane.b32.xlu0 %v396_v62, %s956_s28  ;;  %v380_v63 = vpop.permute.xlu1 %379  ;;  %v441_v24 = vrot.slane %v432_v17, 1 }
 0x229   :  { %v1193_v3 = vadd.f32 %v380_v63, %v368_v61  ;;  %v440_v20 = vsel %vm393_vm3, %v438_v16, %v439_v19 }
 0x22b   :  { %v398_v10 = vrot.slane %v1193_v3, 1  ;;  %v433_v14 = vmul.f32 %v1193_v3, %v1193_v3 }
 0x22d   :  { %406 = vrot.lane.b32.xlu1 %v398_v10, %s956_s28  ;;  %v399_v13 = vsel %vm393_vm3, %v397_v9, %v398_v10  ;;  %v442_v22 = vrot.slane %v433_v14, 1 }
 0x22e   :  { %404 = vrot.lane.b32.xlu0 %v399_v13, %s956_s28 }
 0x22f   :  { %v443_v23 = vsel %vm393_vm3, %v441_v24, %v442_v22 }
 0x231   :  { %444 = vrot.lane.b32.xlu1 %v440_v20, %s956_s28 }
 0x232   :  { %446 = vrot.lane.b32.xlu0 %v439_v19, %s956_s28 }
 0x235   :  { %450 = vrot.lane.b32.xlu1 %v442_v22, %s956_s28 }
 0x236   :  { %448 = vrot.lane.b32.xlu0 %v443_v23, %s956_s28 }
 0x299   :  { %v403_v0 = vpop.permute.xlu1 %402 }
 0x29a   :  { %v401_v25 = vpop.permute.xlu0 %400  ;;  %v415_v26 = vsel %vm414_vm4, %v403_v0, 0.0 }
 0x29b   :  { %v413_v27 = vsel %vm412_vm5, %v401_v25, 0.0 }
 0x29c   :  { %v416_v7 = vadd.f32 %v415_v26, %v413_v27 }
 0x29f   :  { %v407_v28 = vpop.permute.xlu1 %406 }
 0x2a0   :  { %v405_v8 = vpop.permute.xlu0 %404  ;;  %v419_v6 = vsel %vm414_vm4, %v407_v28, 0.0 }
 0x2a1   :  { %v417_v1 = vsel %vm412_vm5, %v405_v8, 0.0 }
 0x2a2   :  { %v418_v30 = vadd.f32 %v417_v1, %v416_v7 }
 0x2a3   :  { %v445_v31 = vpop.permute.xlu1 %444 }
 0x2a4   :  { %v447_v32 = vpop.permute.xlu0 %446  ;;  %v420_v33 = vadd.f32 %v419_v6, %v418_v30  ;;  %v456_v34 = vsel %vm412_vm5, %v445_v31, 0.0 }
 0x2a5   :  { %v457_v35 = vsel %vm414_vm4, %v447_v32, 0.0 }
 0x2a6   :  { %421 = vadd.xlane.f32.xlu0 %v420_v33  ;;  %v458_v12 = vadd.f32 %v457_v35, %v456_v34 }
 0x2a7   :  { %v451_v36 = vpop.permute.xlu1 %450 }
 0x2a8   :  { %v449_v37 = vpop.permute.xlu0 %448  ;;  %v461_v40 = vsel %vm414_vm4, %v451_v36, 0.0 }
 0x2a9   :  { %v459_v39 = vsel %vm412_vm5, %v449_v37, 0.0 }
 0x2aa   :  { %v460_v11 = vadd.f32 %v459_v39, %v458_v12 }
 0x2ac   :  { %v462_v41 = vadd.f32 %v461_v40, %v460_v11 }
 0x2ae   :  { %463 = vadd.xlane.f32.xlu1 %v462_v41 }
 0x333   :  { %v422_v29 = vpop.xlane.xlu0 %421 }
 0x334   :  { %v423_v42 = vrot.slane %v422_v29, 4 }
 0x336   :  { %v424_v18 = vadd.f32 %v423_v42, %v422_v29 }
 0x338   :  { %v425_v43 = vrot.slane %v424_v18, 2 }
 0x33a   :  { %v426_v44 = vadd.f32 %v425_v43, %v424_v18 }
 0x33b   :  { %v464_v38 = vpop.xlane.xlu1 %463 }
 0x33c   :  { %v465_v45 = vrot.slane %v464_v38, 4  ;;  %v427_v46 = vrot.slane %v426_v44, 1 }
 0x33e   :  { %v466_v47 = vadd.f32 %v465_v45, %v464_v38  ;;  %v428_v48 = vadd.f32 %v427_v46, %v426_v44  ;;  %v657_v44 = vstv %s852_s16 }
 0x340   :  { %v467_v50 = vrot.slane %v466_v47, 2  ;;  %855 = vpush %v428_v48 }
 0x342   :  { %v468_v53 = vadd.f32 %v467_v50, %v466_v47 }
 0x344   :  { %v469_v54 = vrot.slane %v468_v53, 1 }
 0x346   :  { %v470_v49 = vadd.f32 %v469_v54, %v468_v53 }
 0x348   :  { %857 = vpush %v470_v49  ;;  %v1326_v49 = vstv %s853_s17 }
 0x371   :  { %s856_s29 = spop %855 }
 0x372   :  { %s472_s30 = smul.f32 0.0025510204, %s856_s29 }
 0x374   :  { %s474_s5 = smul.f32 %s472_s30, %s472_s30 }
 0x379   :  { %s858_s6 = spop %857 }
 0x37a   :  { %s473_s7 = smul.f32 0.0025510204, %s858_s6 }
 0x37c   :  { %s475_s8 = ssub.f32 %s473_s7, %s474_s5 }
 0x37e   :  { %s476_s10 = smax.f32 %s957_s9, %s475_s8 }
 0x37f   :  { %s477_s11 = sadd.f32 1e-05, %s476_s10 }
 0x381   :  { %v478_v56 = vstv %s477_s11 }
 0x382   :  { %878 = vrsqrt.f32 %v478_v56 }
 0x38c   :  { %v879_v52 = vpop.eup %878 }
 0x38d   :  { %859 = vpush %v879_v52 }
 0x3be   :  { %s860_s14 = spop %859 }
 0x3bf   :  { %s481_s0 = smul.f32 %s860_s14, %s89_s12 }
 0x3c1   :  { %s482_s1 = smul.f32 %s481_s0, %s472_s30  ;;  %v499_v58 = vstv %s481_s0 }
 0x3c2   :  { %v501_v59 = vmul.f32 %v499_v58, %v1184_v55  ;;  %v500_v60 = vmul.f32 %v499_v58, %v1182_v51  ;;  %v503_v63 = vmul.f32 %v499_v58, %v1193_v3  ;;  %v502_v21 = vmul.f32 %v499_v58, %v1188_v15 }
 0x3c3   :  { %s483_s15 = ssub.f32 %s854_s13, %s482_s1  ;;  %v484_v55 = vadd.s32 8, %v1016_v5  ;;  %v486_v51 = vand.u32 127, %v95_v2 }
 0x3c5   :  { %v504_v57 = vstv %s483_s15  ;;  %vm490_vm6 = vcmp.le.s32.totalorder %v484_v55, 14  ;;  %vm493_vm7 = vcmp.ge.s32.totalorder %v486_v51, 1  ;;  %vm496_vm10 = vcmp.le.s32.totalorder %v486_v51, 14 }
 0x3c6   :  { %v506_v61 = vadd.f32 %v504_v57, %v501_v59  ;;  %v505_v62 = vadd.f32 %v504_v57, %v500_v60  ;;  %v508_v4 = vadd.f32 %v504_v57, %v503_v63  ;;  %v507_v9 = vadd.f32 %v504_v57, %v502_v21  ;;  %vm495_vm9 = vmand %vm490_vm6, %vm493_vm7 }
 0x3c7   :  { %vm494_vm11 = vmand %vm487_vm8, %vm493_vm7 }
 0x3c8   :  { %519 = vrot.lane.b32.xlu1 %v506_v61, %s954_s24  ;;  %517 = vrot.lane.b32.xlu0 %v505_v62, %s954_s24  ;;  %vm498_vm12 = vmand %vm495_vm9, %vm496_vm10 }
 0x3c9   :  { %vm497_vm13 = vmand %vm494_vm11, %vm496_vm10 }
 0x3cc   :  { %523 = vrot.lane.b32.xlu1 %v508_v4, %s954_s24  ;;  %521 = vrot.lane.b32.xlu0 %v507_v9, %s954_s24  ;;  %s847_s24 = sld [smem:[#allocation6 + $0x2]] }
 0x43a   :  { %v520_v15 = vpop.permute.xlu1 %519  ;;  %v518_v3 = vpop.permute.xlu0 %517 }
 0x43b   :  { %v1225_v10 = vsel %vm498_vm12, %v520_v15, 0.0  ;;  %v1227_v19 = vsel %vm497_vm13, %v518_v3, 0.0  ;;  %v580_v15 = vstv %s848_s18 }
 0x43c   :  { %v619_v13 = vrot.slane %v1227_v19, 2  ;;  %v621_v2 = vrot.slane %v1225_v10, 2  ;;  %v572_v27 = vrot.slane %v1227_v19, 1  ;;  %v574_v28 = vrot.slane %v1225_v10, 1 }
 0x43e   :  { %v524_v14 = vpop.permute.xlu1 %523  ;;  %v522_v16 = vpop.permute.xlu0 %521  ;;  %v1232_v17 = vsel %vm623_vm14, %v621_v2, %v619_v13  ;;  %v1234_v20 = vsel %vm623_vm14, %v619_v13, %v621_v2  ;;  %v1258_v7 = vsel %vm185_vm0, %v574_v28, %v572_v27  ;;  %v1262_v8 = vsel %vm185_vm0, %v572_v27, %v574_v28 }
 0x43f   :  { %v1236_v22 = vsel %vm498_vm12, %v524_v14, 0.0  ;;  %v1238_v24 = vsel %vm497_vm13, %v522_v16, 0.0  ;;  %636 = vrot.lane.b32.xlu1 %v1232_v17, %s950_s3  ;;  %633 = vrot.lane.b32.xlu0 %v1234_v20, %s950_s3  ;;  %v582_v2 = vmul.f32 %v580_v15, %v1258_v7  ;;  %v581_v14 = vmul.f32 %v580_v15, %v1262_v8 }
 0x440   :  { %v620_v23 = vrot.slane %v1238_v24, 2  ;;  %v622_v0 = vrot.slane %v1236_v22, 2  ;;  %v573_v1 = vrot.slane %v1238_v24, 1  ;;  %v575_v30 = vrot.slane %v1236_v22, 1 }
 0x442   :  { %v1246_v25 = vsel %vm623_vm14, %v622_v0, %v620_v23  ;;  %v1248_v26 = vsel %vm623_vm14, %v620_v23, %v622_v0  ;;  %v1272_v6 = vsel %vm185_vm0, %v575_v30, %v573_v1  ;;  %v1276_v31 = vsel %vm185_vm0, %v573_v1, %v575_v30 }
 0x443   :  { %642 = vrot.lane.b32.xlu1 %v1246_v25, %s950_s3  ;;  %639 = vrot.lane.b32.xlu0 %v1248_v26, %s950_s3  ;;  %v584_v16 = vmul.f32 %v580_v15, %v1272_v6  ;;  %v583_v23 = vmul.f32 %v580_v15, %v1276_v31  ;;  %v614_v0 = vstv %s850_s19 }
 0x447   :  { %588 = vrot.lane.b32.xlu1 %v1258_v7, %s950_s3  ;;  %585 = vrot.lane.b32.xlu0 %v1262_v8, %s950_s3 }
 0x44b   :  { %594 = vrot.lane.b32.xlu1 %v1272_v6, %s950_s3  ;;  %591 = vrot.lane.b32.xlu0 %v1276_v31, %s950_s3 }
 0x4b1   :  { %v637_v32 = vpop.permute.xlu1 %636  ;;  %v634_v33 = vpop.permute.xlu0 %633 }
 0x4b2   :  { %v638_v34 = vsel %vm102_vm2, %v637_v32, %v1232_v17  ;;  %v635_v35 = vsel %vm102_vm2, %v634_v33, %v1234_v20 }
 0x4b3   :  { %647 = vrot.lane.b32.xlu1 %v638_v34, %s950_s3  ;;  %645 = vrot.lane.b32.xlu0 %v635_v35, %s950_s3 }
 0x4b5   :  { %v643_v5 = vpop.permute.xlu1 %642  ;;  %v640_v12 = vpop.permute.xlu0 %639 }
 0x4b6   :  { %v644_v36 = vsel %vm102_vm2, %v643_v5, %v1246_v25  ;;  %v641_v37 = vsel %vm102_vm2, %v640_v12, %v1248_v26 }
 0x4b7   :  { %651 = vrot.lane.b32.xlu1 %v644_v36, %s950_s3  ;;  %649 = vrot.lane.b32.xlu0 %v641_v37, %s950_s3 }
 0x4b9   :  { %v589_v39 = vpop.permute.xlu1 %588  ;;  %v586_v11 = vpop.permute.xlu0 %585 }
 0x4ba   :  { %v590_v40 = vsel %vm102_vm2, %v589_v39, %v1258_v7  ;;  %v587_v41 = vsel %vm102_vm2, %v586_v11, %v1262_v8 }
 0x4bb   :  { %541 = vrot.lane.b32.xlu1 %v1225_v10, %s950_s3  ;;  %538 = vrot.lane.b32.xlu0 %v1227_v19, %s950_s3 }
 0x4bd   :  { %v595_v29 = vpop.permute.xlu1 %594  ;;  %v592_v42 = vpop.permute.xlu0 %591 }
 0x4be   :  { %v596_v18 = vsel %vm102_vm2, %v595_v29, %v1272_v6  ;;  %v593_v43 = vsel %vm102_vm2, %v592_v42, %v1276_v31 }
 0x4bf   :  { %547 = vrot.lane.b32.xlu1 %v1236_v22, %s950_s3  ;;  %544 = vrot.lane.b32.xlu0 %v1238_v24, %s950_s3 }
 0x4c3   :  { %599 = vrot.lane.b32.xlu1 %v590_v40, %s950_s3  ;;  %597 = vrot.lane.b32.xlu0 %v587_v41, %s950_s3 }
 0x4c7   :  { %603 = vrot.lane.b32.xlu1 %v596_v18, %s950_s3  ;;  %601 = vrot.lane.b32.xlu0 %v593_v43, %s950_s3 }
 0x525   :  { %v648_v38 = vpop.permute.xlu1 %647  ;;  %v646_v45 = vpop.permute.xlu0 %645 }
 0x526   :  { %v1316_v46 = vsel %vm102_vm2, %v648_v38, %v1232_v17  ;;  %v1320_v47 = vsel %vm102_vm2, %v646_v45, %v1234_v20 }
 0x527   :  { %v659_v48 = vmul.f32 %v657_v44, %v1316_v46  ;;  %v658_v50 = vmul.f32 %v657_v44, %v1320_v47 }
 0x529   :  { %733 = vrot.lane.b32.xlu1 %v659_v48, %s953_s21  ;;  %v652_v53 = vpop.permute.xlu1 %651  ;;  %731 = vrot.lane.b32.xlu0 %v658_v50, %s953_s21  ;;  %v650_v54 = vpop.permute.xlu0 %649  ;;  %v567_v50 = vstv %s847_s24 }
 0x52a   :  { %v656_v56 = vsel %vm102_vm2, %v652_v53, %v1246_v25  ;;  %v655_v52 = vsel %vm102_vm2, %v650_v54, %v1248_v26 }
 0x52b   :  { %v661_v58 = vmul.f32 %v657_v44, %v656_v56  ;;  %v1333_v59 = vmul.f32 %v1326_v49, %v656_v56  ;;  %v660_v60 = vmul.f32 %v657_v44, %v655_v52  ;;  %v1336_v57 = vmul.f32 %v1326_v49, %v655_v52 }
 0x52d   :  { %737 = vrot.lane.b32.xlu1 %v661_v58, %s953_s21  ;;  %v542_v61 = vpop.permute.xlu1 %541  ;;  %735 = vrot.lane.b32.xlu0 %v660_v60, %s953_s21  ;;  %v539_v62 = vpop.permute.xlu0 %538 }
 0x52e   :  { %v543_v63 = vsel %vm102_vm2, %v542_v61, %v1225_v10  ;;  %v540_v21 = vsel %vm102_vm2, %v539_v62, %v1227_v19 }
 0x531   :  { %552 = vrot.lane.b32.xlu1 %v543_v63, %s950_s3  ;;  %v548_v4 = vpop.permute.xlu1 %547  ;;  %550 = vrot.lane.b32.xlu0 %v540_v21, %s950_s3  ;;  %v545_v9 = vpop.permute.xlu0 %544 }
 0x532   :  { %v549_v55 = vsel %vm102_vm2, %v548_v4, %v1236_v22  ;;  %v546_v51 = vsel %vm102_vm2, %v545_v9, %v1238_v24 }
 0x535   :  { %556 = vrot.lane.b32.xlu1 %v549_v55, %s950_s3  ;;  %554 = vrot.lane.b32.xlu0 %v546_v51, %s950_s3  ;;  %v600_v3 = vpop.permute.xlu1 %599  ;;  %v598_v13 = vpop.permute.xlu0 %597  ;;  %s851_s3 = sld [smem:[#allocation6 + $0x6]] }
 0x536   :  { %v1358_v27 = vsel %vm102_vm2, %v600_v3, %v1258_v7  ;;  %v1362_v28 = vsel %vm102_vm2, %v598_v13, %v1262_v8  ;;  %v664_v13 = vmul.f32 %v1326_v49, %v1316_v46 }
 0x537   :  { %v616_v32 = vmul.f32 %v614_v0, %v1358_v27  ;;  %v615_v33 = vmul.f32 %v614_v0, %v1362_v28 }
 0x539   :  { %693 = vrot.lane.b32.xlu1 %v582_v2, %s958_s20  ;;  %691 = vrot.lane.b32.xlu0 %v581_v14, %s958_s20  ;;  %v604_v1 = vpop.permute.xlu1 %603  ;;  %v602_v30 = vpop.permute.xlu0 %601  ;;  %v663_v2 = vmul.f32 %v1326_v49, %v1320_v47 }
 0x53a   :  { %v1368_v34 = vsel %vm102_vm2, %v604_v1, %v1272_v6  ;;  %v1372_v7 = vsel %vm102_vm2, %v602_v30, %v1276_v31 }
 0x53b   :  { %v618_v8 = vmul.f32 %v614_v0, %v1368_v34  ;;  %v617_v35 = vmul.f32 %v614_v0, %v1372_v7  ;;  %v628_v5 = vstv %s851_s3 }
 0x53c   :  { %v630_v6 = vmul.f32 %v628_v5, %v1232_v17  ;;  %v629_v12 = vmul.f32 %v628_v5, %v1234_v20  ;;  %v632_v11 = vmul.f32 %v628_v5, %v1246_v25  ;;  %v631_v40 = vmul.f32 %v628_v5, %v1248_v26 }
 0x53d   :  { %697 = vrot.lane.b32.xlu1 %v584_v16, %s958_s20  ;;  %695 = vrot.lane.b32.xlu0 %v583_v23, %s958_s20  ;;  %v562_v17 = vstv %s846_s22  ;;  %v609_v23 = vstv %s849_s26 }
 0x53e   :  { %v611_v30 = vmul.f32 %v609_v23, %v1358_v27  ;;  %v613_v47 = vmul.f32 %v609_v23, %v1368_v34  ;;  %v612_v49 = vmul.f32 %v609_v23, %v1372_v7 }
 0x541   :  { %713 = vrot.lane.b32.xlu1 %v616_v32, %s953_s21  ;;  %711 = vrot.lane.b32.xlu0 %v615_v33, %s953_s21  ;;  %v610_v32 = vmul.f32 %v609_v23, %v1362_v28 }
 0x545   :  { %717 = vrot.lane.b32.xlu1 %v618_v8, %s953_s21  ;;  %715 = vrot.lane.b32.xlu0 %v617_v35, %s953_s21 }
 0x59b   :  { %v734_v31 = vpop.permute.xlu1 %733  ;;  %v732_v36 = vpop.permute.xlu0 %731 }
 0x59c   :  { %v744_v37 = vadd.f32 %v734_v31, %v630_v6  ;;  %v743_v39 = vadd.f32 %v732_v36, %v629_v12 }
 0x59e   :  { %773 = vrot.lane.b32.xlu1 %v744_v37, %s959_s23  ;;  %771 = vrot.lane.b32.xlu0 %v743_v39, %s959_s23 }
 0x59f   :  { %v738_v41 = vpop.permute.xlu1 %737  ;;  %v736_v29 = vpop.permute.xlu0 %735 }
 0x5a0   :  { %v746_v42 = vadd.f32 %v738_v41, %v632_v11  ;;  %v745_v18 = vadd.f32 %v736_v29, %v631_v40 }
 0x5a2   :  { %777 = vrot.lane.b32.xlu1 %v746_v42, %s959_s23  ;;  %775 = vrot.lane.b32.xlu0 %v745_v18, %s959_s23  ;;  %v533_v18 = vstv %s80_s2 }
 0x5a3   :  { %v553_v20 = vpop.permute.xlu1 %552  ;;  %v551_v43 = vpop.permute.xlu0 %550 }
 0x5a4   :  { %v559_v44 = vsel %vm102_vm2, %v553_v20, %v1225_v10  ;;  %v558_v38 = vsel %vm102_vm2, %v551_v43, %v1227_v19  ;;  %v534_v20 = vmul.f32 %v533_v18, %v1227_v19 }
 0x5a5   :  { %v564_v45 = vmul.f32 %v562_v17, %v559_v44  ;;  %v563_v25 = vmul.f32 %v562_v17, %v558_v38  ;;  %v569_v58 = vmul.f32 %v567_v50, %v559_v44  ;;  %v568_v60 = vmul.f32 %v567_v50, %v558_v38 }
 0x5a7   :  { %v557_v48 = vpop.permute.xlu1 %556  ;;  %673 = vrot.lane.b32.xlu1 %v564_v45, %s953_s21  ;;  %671 = vrot.lane.b32.xlu0 %v563_v25, %s953_s21  ;;  %v555_v26 = vpop.permute.xlu0 %554 }
 0x5a8   :  { %v561_v53 = vsel %vm102_vm2, %v557_v48, %v1236_v22  ;;  %v560_v54 = vsel %vm102_vm2, %v555_v26, %v1238_v24  ;;  %v537_v26 = vmul.f32 %v533_v18, %v1236_v22 }
 0x5a9   :  { %v566_v56 = vmul.f32 %v562_v17, %v561_v53  ;;  %v565_v52 = vmul.f32 %v562_v17, %v560_v54  ;;  %v571_v4 = vmul.f32 %v567_v50, %v561_v53  ;;  %v570_v9 = vmul.f32 %v567_v50, %v560_v54 }
 0x5aa   :  { %v535_v17 = vmul.f32 %v533_v18, %v1225_v10  ;;  %v536_v50 = vmul.f32 %v533_v18, %v1238_v24 }
 0x5ab   :  { %v694_v61 = vpop.permute.xlu1 %693  ;;  %677 = vrot.lane.b32.xlu1 %v566_v56, %s953_s21  ;;  %675 = vrot.lane.b32.xlu0 %v565_v52, %s953_s21  ;;  %v692_v62 = vpop.permute.xlu0 %691 }
 0x5ac   :  { %v704_v63 = vadd.f32 %v694_v61, %v569_v58  ;;  %v703_v21 = vadd.f32 %v692_v62, %v568_v60 }
 0x5af   :  { %753 = vrot.lane.b32.xlu1 %v704_v63, %s960_s25  ;;  %v698_v55 = vpop.permute.xlu1 %697  ;;  %751 = vrot.lane.b32.xlu0 %v703_v21, %s960_s25  ;;  %v696_v51 = vpop.permute.xlu0 %695 }
 0x5b0   :  { %v706_v15 = vadd.f32 %v698_v55, %v571_v4  ;;  %v705_v3 = vadd.f32 %v696_v51, %v570_v9 }
 0x5b3   :  { %757 = vrot.lane.b32.xlu1 %v706_v15, %s960_s25  ;;  %755 = vrot.lane.b32.xlu0 %v705_v3, %s960_s25  ;;  %v714_v14 = vpop.permute.xlu1 %713  ;;  %v712_v16 = vpop.permute.xlu0 %711 }
 0x5b4   :  { %v724_v33 = vadd.f32 %v714_v14, %v611_v30  ;;  %v723_v8 = vadd.f32 %v712_v16, %v610_v32 }
 0x5b7   :  { %813 = vrot.lane.b32.xlu1 %v664_v13, %s960_s25  ;;  %811 = vrot.lane.b32.xlu0 %v663_v2, %s960_s25  ;;  %v718_v0 = vpop.permute.xlu1 %717  ;;  %v716_v1 = vpop.permute.xlu0 %715 }
 0x5b8   :  { %v726_v12 = vadd.f32 %v718_v0, %v613_v47  ;;  %v725_v31 = vadd.f32 %v716_v1, %v612_v49 }
 0x610   :  { %v774_v46 = vpop.permute.xlu1 %773  ;;  %v772_v35 = vpop.permute.xlu0 %771 }
 0x611   :  { %v784_v5 = vadd.f32 %v774_v46, %v724_v33  ;;  %v783_v6 = vadd.f32 %v772_v35, %v723_v8 }
 0x613   :  { %793 = vrot.lane.b32.xlu1 %v784_v5, %s953_s21  ;;  %791 = vrot.lane.b32.xlu0 %v783_v6, %s953_s21 }
 0x614   :  { %v778_v36 = vpop.permute.xlu1 %777  ;;  %v776_v27 = vpop.permute.xlu0 %775 }
 0x615   :  { %v786_v37 = vadd.f32 %v778_v36, %v726_v12  ;;  %v785_v28 = vadd.f32 %v776_v27, %v725_v31 }
 0x617   :  { %797 = vrot.lane.b32.xlu1 %v786_v37, %s953_s21  ;;  %795 = vrot.lane.b32.xlu0 %v785_v28, %s953_s21 }
 0x619   :  { %v674_v34 = vpop.permute.xlu1 %673  ;;  %v672_v7 = vpop.permute.xlu0 %671 }
 0x61a   :  { %v683_v38 = vadd.f32 %v672_v7, %v534_v20 }
 0x61b   :  { %817 = vrot.lane.b32.xlu1 %v1333_v59, %s960_s25  ;;  %815 = vrot.lane.b32.xlu0 %v1336_v57, %s960_s25  ;;  %v684_v59 = vadd.f32 %v674_v34, %v535_v17 }
 0x61d   :  { %v678_v39 = vpop.permute.xlu1 %677  ;;  %v676_v11 = vpop.permute.xlu0 %675 }
 0x61e   :  { %v686_v56 = vadd.f32 %v678_v39, %v537_v26  ;;  %v685_v52 = vadd.f32 %v676_v11, %v536_v50 }
 0x621   :  { %v754_v40 = vpop.permute.xlu1 %753  ;;  %v752_v41 = vpop.permute.xlu0 %751 }
 0x622   :  { %v764_v45 = vadd.f32 %v754_v40, %v684_v59  ;;  %v763_v57 = vadd.f32 %v752_v41, %v683_v38 }
 0x625   :  { %v758_v29 = vpop.permute.xlu1 %757  ;;  %v756_v42 = vpop.permute.xlu0 %755 }
 0x626   :  { %v766_v61 = vadd.f32 %v758_v29, %v686_v56  ;;  %v765_v62 = vadd.f32 %v756_v42, %v685_v52 }
 0x629   :  { %v814_v43 = vpop.permute.xlu1 %813  ;;  %v812_v44 = vpop.permute.xlu0 %811 }
 0x685   :  { %v794_v25 = vpop.permute.xlu1 %793  ;;  %v792_v48 = vpop.permute.xlu0 %791 }
 0x686   :  { %v804_v53 = vadd.f32 %v794_v25, %v764_v45  ;;  %v803_v54 = vadd.f32 %v792_v48, %v763_v57 }
 0x688   :  { %v824_v58 = vadd.f32 %v814_v43, %v804_v53  ;;  %v823_v10 = vadd.f32 %v812_v44, %v803_v54 }
 0x689   :  { %v798_v60 = vpop.permute.xlu1 %797  ;;  %v796_v19 = vpop.permute.xlu0 %795 }
 0x68a   :  { %828 = vst.msk [vmem:[%s1442_s4 + $0x8] sm:$0x3f] %vm414_vm4, %v824_v58  ;;  %v806_v22 = vadd.f32 %v798_v60, %v766_v61  ;;  %v805_v24 = vadd.f32 %v796_v19, %v765_v62 }
 0x68b   :  { %827 = vst.msk [vmem:[%s1442_s4] sm:$0xff] %vm412_vm5, %v823_v10 }
 0x68d   :  { %v818_v63 = vpop.permute.xlu1 %817  ;;  %v816_v21 = vpop.permute.xlu0 %815 }
 0x68e   :  { %v826_v4 = vadd.f32 %v818_v63, %v806_v22  ;;  %v825_v9 = vadd.f32 %v816_v21, %v805_v24 }
 0x690   :  { %830 = vst.msk [vmem:[%s1442_s4 + $0x18] sm:$0x3f] %vm414_vm4, %v826_v4 }
 0x691   :  { %829 = vst.msk [vmem:[%s1442_s4 + $0x10] sm:$0xff] %vm412_vm5, %v825_v9 }
 0x692   :  { %835 = vsyncpa [#allocation3], 1 }
 0x693   :  { %836 = vsyncpa [#allocation4], 1 }
 0x694   :  { %837 = vsyncpa [#allocation7], 1 }

</bundles_post_ra>
